<compile_context>
chip_gen: v5e
topology: v5e:2x2
jax: 0.10.0
libtpu: 0.0.40
codegen_flags: <defaults>
</compile_context>

<pallas_src>
import jax
import jax.numpy as jnp
from jax import lax
from jax.experimental import pallas as pl
from jax.experimental.pallas import tpu as pltpu

_LANE = 128


# ----------------------------------------------------------------------------- helpers


def _apply_act(h, activation_fn):
    """Hidden-layer activation in f32.  Unknown strings -> identity (the PyTorch
    module simply appends no activation in that case)."""
    if activation_fn == "relu":
        return jnp.maximum(h, 0.0)
    if activation_fn == "tanh":
        return jnp.tanh(h)
    if activation_fn == "silu":
        return h * jax.nn.sigmoid(h)
    return h


def _round_up(n, m):
    return ((n + m - 1) // m) * m


def pad_hidden_dims(weights, biases, lane=_LANE):
    """Zero-pad hidden feature widths to multiples of `lane` (exact: act(0)=0 and the
    matching rows of the next weight are zero, so padded lanes contribute nothing)."""
    n = len(weights)
    weights_p, biases_p = [], []
    prev_in = weights[0].shape[0]  # input_size is left unpadded
    for i, (w, b) in enumerate(zip(weights, biases)):
        in_i, out_i = w.shape
        out_p = out_i if i == n - 1 else _round_up(out_i, lane)
        w_p = jnp.zeros((prev_in, out_p), w.dtype).at[:in_i, :out_i].set(w)
        b_p = jnp.zeros((1, out_p), b.dtype).at[:, :out_i].set(b)
        weights_p.append(w_p)
        biases_p.append(b_p)
        prev_in = out_p
    return weights_p, biases_p


def _tpu_vmem_bytes():
    try:
        return int(pltpu.get_tpu_info().vmem_capacity_bytes)
    except Exception:
        return 64 * 1024 * 1024  # conservative fallback == v7x per-TC VMEM


def _tensorcores_per_chip():
    try:
        kind = jax.devices()[0].device_kind.lower()
    except Exception:
        return 1
    return 2 if ("v7" in kind or "7x" in kind) else 1


def _choose_batch_tiling(batch, row_bytes, row_budget_bytes, num_cores):
    """Pick a 128-aligned batch tile: one tile on single-TC chips, an even tile
    count on 2-TC chips, capped so the streamed per-tile footprint fits VMEM."""
    max_rows = max(_LANE, (row_budget_bytes // max(row_bytes, 1)) // _LANE * _LANE)
    n_tiles = pl.cdiv(batch, max_rows)
    if num_cores > 1 and batch > _LANE:
        n_tiles = num_cores * pl.cdiv(n_tiles, num_cores)   # multiple of #cores
    tb = _round_up(pl.cdiv(batch, n_tiles), _LANE)
    n_tiles = pl.cdiv(batch, tb)
    return tb, n_tiles, tb * n_tiles


# ----------------------------------------------------------------------------- kernel


def _make_mlp_kernel(num_layers, activation_fn):
    """Kernel computing the full MLP forward on one batch tile."""

    def kernel(*refs):
        # refs = (x_ref, w0, b0, ..., w_last(8,in_last) bf16, b_last(1,1) f32, out_ref)
        x_ref = refs[0]
        o_ref = refs[-1]
        h = x_ref[...]

        # Hidden layers: bf16 MXU matmuls (weights pre-cast host-side), f32 accum,
        # f32 bias + activation epilogue on the VPU/EUP.
        for li in range(num_layers - 1):
            w = refs[1 + 2 * li][...]          # (in_p, out_p) bf16
            b = refs[2 + 2 * li][...]          # (1, out_p)   f32
            h = jnp.dot(h.astype(jnp.bfloat16), w,
                        preferred_element_type=jnp.float32) + b
            h = _apply_act(h, activation_fn)

        # Final Linear(...,1) + Sigmoid, producing a LANE-DENSE (1, TB) block:
        # W_row (8, K) x H (TB, K)^T -> (8, TB); row 0 holds the real logits
        # (rows 1..7 of W_row are zero padding for sublane alignment).
        w_last = refs[-3][...]                 # (8, in_last) bf16
        b_last = refs[-2][...]                 # (1, 1)       f32
        logits8 = lax.dot_general(
            w_last, h.astype(jnp.bfloat16),
            dimension_numbers=(((1,), (1,)), ((), ())),
            preferred_element_type=jnp.float32)            # (8, TB)
        logit = logits8[0:1, :] + b_last                    # (1, TB)
        o_ref[...] = jax.nn.sigmoid(logit).astype(o_ref.dtype)

    return kernel


# ----------------------------------------------------------------------------- wrapper


def deep_alzheimer_net_forward(x, weights, biases, activation_fn="relu",
                               batch_tile=None):
    """Run the MLP forward inside a single batch-tiled Pallas kernel.

    x:       (B, input_size) float32 (bf16 also accepted)
    weights: list of (in_i, out_i) float32 arrays (PyTorch weight.T), last out = 1
    biases:  list of (1, out_i) float32 arrays
    """
    num_layers = len(weights)
    assert num_layers == len(biases) and num_layers >= 1
    B, input_size = x.shape
    assert weights[0].shape[0] == input_size
    assert weights[-1].shape[1] == 1

    # Lane-align hidden feature widths.
    weights_p, biases_p = pad_hidden_dims(weights, biases)
    in_last = weights_p[-1].shape[0]
    hidden_widths = [w.shape[1] for w in weights_p[:-1]]

    # ---- generation-aware tile / VMEM budgeting ------------------------------
    vmem_cap = _tpu_vmem_bytes()
    num_cores = _tensorcores_per_chip()
    vmem_ceiling = min(int(0.70 * vmem_cap), 100 * 1024 * 1024)  # headroom for Mosaic

    x_bytes = x.dtype.itemsize
    # per-row live VMEM: double-buffered x/out stream + f32 & bf16 activation copies
    row_bytes = 2 * (input_size * x_bytes + 4) + 6 * (input_size + sum(hidden_widths) + in_last)

    if batch_tile is None:
        TB, n_tiles, B_pad = _choose_batch_tiling(B, row_bytes, vmem_ceiling // 2,
                                                  num_cores)
    else:
        TB = _round_up(int(batch_tile), _LANE)
        n_tiles = pl.cdiv(B, TB)
        B_pad = TB * n_tiles

    x_p = x if B_pad == B else jnp.zeros((B_pad, input_size), x.dtype).at[:B].set(x)

    # ---- operands / specs -----------------------------------------------------
    kernel = _make_mlp_kernel(num_layers, activation_fn)

    operands = [x_p]
    in_specs = [pl.BlockSpec((TB, input_size), lambda i: (i, 0))]
    for li, (w, b) in enumerate(zip(weights_p, biases_p)):
        if li == num_layers - 1:
            # (in_last, 1) -> lane-major (8, in_last) bf16; row 0 holds the weights,
            # rows 1..7 are zero (sublane alignment for the final M=8 matmul).
            w_row = jnp.zeros((8, in_last), jnp.bfloat16).at[0, :].set(
                w[:, 0].astype(jnp.bfloat16))
            operands.append(w_row)
            in_specs.append(pl.BlockSpec(w_row.shape, lambda i: (0, 0)))
        else:
            operands.append(w.astype(jnp.bfloat16))       # pre-cast host-side
            in_specs.append(pl.BlockSpec(w.shape, lambda i: (0, 0)))
        operands.append(b)                                  # f32 bias
        in_specs.append(pl.BlockSpec(b.shape, lambda i: (0, 0)))
    # Lane-dense output: (1, B_pad), each grid step writes a (1, TB) lane slab.
    out_specs = pl.BlockSpec((1, TB), lambda i: (0, i))

    # NOTE: constant index_maps keep params VMEM-resident across grid steps; if a
    # Mosaic dump shows them being re-DMA'd per step, pin with pipeline_mode=pl.Buffered(1).

    # VMEM budget: double-buffered x/out tiles + params (x2 safety) + live activations.
    param_bytes = sum(int(a.size) * a.dtype.itemsize for a in operands[1:])
    vmem_needed = (2 * (TB * input_size * x_bytes + TB * 4)
                   + 2 * param_bytes
                   + 6 * TB * (input_size + sum(hidden_widths) + in_last))
    vmem_limit = int(min(max(vmem_needed, 16 * 1024 * 1024), vmem_ceiling))

    # Advisory cost estimate for the XLA scheduler.
    flops = 2 * B_pad * sum(w.shape[0] * w.shape[1] for w in weights_p)
    transcendentals = B_pad  # final sigmoid
    if activation_fn in ("tanh", "silu"):
        transcendentals += B_pad * sum(hidden_widths)
    bytes_accessed = B_pad * input_size * x_bytes + param_bytes + B_pad * 4

    out_row = pl.pallas_call(
        kernel,
        out_shape=jax.ShapeDtypeStruct((1, B_pad), jnp.float32),
        grid=(n_tiles,),
        in_specs=in_specs,
        out_specs=out_specs,
        compiler_params=pltpu.CompilerParams(
            dimension_semantics=("parallel",),   # shards batch tiles across v7x's 2 TCs
            vmem_limit_bytes=vmem_limit,
        ),
        cost_estimate=pl.CostEstimate(
            flops=int(flops),
            transcendentals=int(transcendentals),
            bytes_accessed=int(bytes_accessed),
        ),
    )(*operands)

    return out_row.reshape(B_pad, 1)[:B]


# ----------------------------------------------------------------------------- init / refs


def init_params(key, input_size, hidden_sizes):
    """Deterministic init mimicking nn.Linear's default U(-1/sqrt(in), 1/sqrt(in))."""
    sizes = [input_size] + list(hidden_sizes) + [1]
    weights, biases = [], []
    for i in range(len(sizes) - 1):
        fan_in, fan_out = sizes[i], sizes[i + 1]
        key, kw, kb = jax.random.split(key, 3)
        bound = 1.0 / jnp.sqrt(jnp.float32(fan_in))
        w = jax.random.uniform(kw, (fan_in, fan_out), jnp.float32, -bound, bound)
        b = jax.random.uniform(kb, (1, fan_out), jnp.float32, -bound, bound)
        weights.append(w)   # stored as (in, out) == PyTorch weight.T
        biases.append(b)
    return weights, biases


def reference_forward(x, weights, biases, activation_fn="relu"):
    """Pure-JAX f32 reference (module semantics)."""
    h = x
    n = len(weights)
    for i, (w, b) in enumerate(zip(weights, biases)):
        h = h @ w + b
        h = _apply_act(h, activation_fn) if i < n - 1 else jax.nn.sigmoid(h)
    return h


def matched_reference(x, weights, biases, activation_fn="relu"):
    """Reference mirroring the kernel's numerics (bf16 MXU inputs, f32 accumulation,
    bf16 final matmul) for tight-tolerance comparison."""
    h = x.astype(jnp.float32)
    n = len(weights)
    for i in range(n - 1):
        h = jnp.dot(h.astype(jnp.bfloat16), weights[i].astype(jnp.bfloat16),
                    preferred_element_type=jnp.float32) + biases[i]
        h = _apply_act(h, activation_fn)
    wl = weights[-1].T.astype(jnp.bfloat16)               # (1, in_last)
    logit = lax.dot_general(wl, h.astype(jnp.bfloat16),
                            dimension_numbers=(((1,), (1,)), ((), ())),
                            preferred_element_type=jnp.float32) + biases[-1]
    return jax.nn.sigmoid(logit).reshape(-1, 1)


# ----------------------------------------------------------------------------- main


if __name__ == "__main__":
    batch = 300             # not a multiple of the 128-row tile -> exercises padding
    input_size = 32
    hidden_sizes = [64, 32]
    activation_fn = "relu"

    key = jax.random.PRNGKey(0)
    key, kx = jax.random.split(key)
    x = jax.random.normal(kx, (batch, input_size), jnp.float32)
    weights, biases = init_params(key, input_size, hidden_sizes)

    out = deep_alzheimer_net_forward(x, weights, biases, activation_fn)
    out = jax.block_until_ready(out)
    assert out.shape == (batch, 1)
    assert bool(jnp.all(jnp.isfinite(out)))

    ref_tight = matched_reference(x, weights, biases, activation_fn)
    ref_f32 = reference_forward(x, weights, biases, activation_fn)
    assert jnp.allclose(out, ref_tight, atol=2e-3, rtol=2e-3)   # kernel-matched numerics
    assert jnp.allclose(out, ref_f32, atol=3e-2, rtol=3e-2)     # module (f32) semantics

    print("KERNEL_OK")
</pallas_src>

<mosaic_0001>
module attributes {stable_mosaic.version = 11 : i64} {
  func.func @kernel(%arg0: i32, %arg1: memref<384x32xf32, #tpu.memory_space<vmem>>, %arg2: memref<32x128xbf16, #tpu.memory_space<vmem>>, %arg3: memref<1x128xf32, #tpu.memory_space<vmem>>, %arg4: memref<128x128xbf16, #tpu.memory_space<vmem>>, %arg5: memref<1x128xf32, #tpu.memory_space<vmem>>, %arg6: memref<8x128xbf16, #tpu.memory_space<vmem>>, %arg7: memref<1x1xf32, #tpu.memory_space<vmem>>, %arg8: memref<1x384xf32, #tpu.memory_space<vmem>>) attributes {dimension_semantics = [#tpu.dimension_semantics<parallel>], iteration_bounds = array<i64: 1>, scalar_prefetch = 0 : i64, scratch_operands = 0 : i64, tpu.core_type = #tpu.core_type<tc>, window_params = [{transform_indices = @transform_0, window_bounds = array<i64: 384, 32>}, {pipeline_mode = #tpu.pipeline_mode<synchronous>, transform_indices = @transform_1, window_bounds = array<i64: 32, 128>}, {pipeline_mode = #tpu.pipeline_mode<synchronous>, transform_indices = @transform_2, window_bounds = array<i64: 1, 128>}, {pipeline_mode = #tpu.pipeline_mode<synchronous>, transform_indices = @transform_3, window_bounds = array<i64: 128, 128>}, {pipeline_mode = #tpu.pipeline_mode<synchronous>, transform_indices = @transform_4, window_bounds = array<i64: 1, 128>}, {pipeline_mode = #tpu.pipeline_mode<synchronous>, transform_indices = @transform_5, window_bounds = array<i64: 8, 128>}, {pipeline_mode = #tpu.pipeline_mode<synchronous>, transform_indices = @transform_6, window_bounds = array<i64: 1, 1>}, {transform_indices = @transform_7, window_bounds = array<i64: 1, 384>}]} {
    %c0 = arith.constant 0 : index
    %c0_0 = arith.constant 0 : index
    %0 = vector.load %arg1[%c0, %c0_0] : memref<384x32xf32, #tpu.memory_space<vmem>>, vector<384x32xf32>
    %c0_1 = arith.constant 0 : index
    %c0_2 = arith.constant 0 : index
    %1 = vector.load %arg2[%c0_1, %c0_2] : memref<32x128xbf16, #tpu.memory_space<vmem>>, vector<32x128xbf16>
    %c0_3 = arith.constant 0 : index
    %c0_4 = arith.constant 0 : index
    %2 = vector.load %arg3[%c0_3, %c0_4] : memref<1x128xf32, #tpu.memory_space<vmem>>, vector<1x128xf32>
    %3 = arith.truncf %0 : vector<384x32xf32> to vector<384x32xbf16>
    %cst = arith.constant dense<0.000000e+00> : vector<384x128xf32>
    %4 = tpu.matmul %3, %1, %cst {dimension_numbers = #tpu.dot_dimension_numbers<[1], [0], [0], [1], [0, 0, 1, 1], [], []>} : vector<384x32xbf16>, vector<32x128xbf16>, vector<384x128xf32> -> vector<384x128xf32>
    %5 = vector.broadcast %2 : vector<1x128xf32> to vector<384x128xf32>
    %6 = arith.addf %4, %5 : vector<384x128xf32>
    %cst_5 = arith.constant 0.000000e+00 : f32
    %7 = vector.broadcast %cst_5 : f32 to vector<384x128xf32>
    %8 = arith.maximumf %6, %7 : vector<384x128xf32>
    %c0_6 = arith.constant 0 : index
    %c0_7 = arith.constant 0 : index
    %9 = vector.load %arg4[%c0_6, %c0_7] : memref<128x128xbf16, #tpu.memory_space<vmem>>, vector<128x128xbf16>
    %c0_8 = arith.constant 0 : index
    %c0_9 = arith.constant 0 : index
    %10 = vector.load %arg5[%c0_8, %c0_9] : memref<1x128xf32, #tpu.memory_space<vmem>>, vector<1x128xf32>
    %11 = arith.truncf %8 : vector<384x128xf32> to vector<384x128xbf16>
    %cst_10 = arith.constant dense<0.000000e+00> : vector<384x128xf32>
    %12 = tpu.matmul %11, %9, %cst_10 {dimension_numbers = #tpu.dot_dimension_numbers<[1], [0], [0], [1], [0, 0, 1, 1], [], []>} : vector<384x128xbf16>, vector<128x128xbf16>, vector<384x128xf32> -> vector<384x128xf32>
    %13 = vector.broadcast %10 : vector<1x128xf32> to vector<384x128xf32>
    %14 = arith.addf %12, %13 : vector<384x128xf32>
    %cst_11 = arith.constant 0.000000e+00 : f32
    %15 = vector.broadcast %cst_11 : f32 to vector<384x128xf32>
    %16 = arith.maximumf %14, %15 : vector<384x128xf32>
    %c0_12 = arith.constant 0 : index
    %c0_13 = arith.constant 0 : index
    %17 = vector.load %arg6[%c0_12, %c0_13] : memref<8x128xbf16, #tpu.memory_space<vmem>>, vector<8x128xbf16>
    %c0_14 = arith.constant 0 : index
    %c0_15 = arith.constant 0 : index
    %18 = vector.load %arg7[%c0_14, %c0_15] : memref<1x1xf32, #tpu.memory_space<vmem>>, vector<1x1xf32>
    %19 = arith.truncf %16 : vector<384x128xf32> to vector<384x128xbf16>
    %cst_16 = arith.constant dense<0.000000e+00> : vector<8x384xf32>
    %20 = tpu.matmul %17, %19, %cst_16 {dimension_numbers = #tpu.dot_dimension_numbers<[1], [1], [0], [0], [0, 0, 1, 0], [], []>} : vector<8x128xbf16>, vector<384x128xbf16>, vector<8x384xf32> -> vector<8x384xf32>
    %21 = vector.extract_strided_slice %20 {offsets = [0, 0], sizes = [1, 384], strides = [1, 1]} : vector<8x384xf32> to vector<1x384xf32>
    %22 = vector.broadcast %18 : vector<1x1xf32> to vector<1x384xf32>
    %23 = arith.addf %21, %22 : vector<1x384xf32>
    %24 = arith.negf %23 : vector<1x384xf32>
    %25 = math.exp %24 : vector<1x384xf32>
    %cst_17 = arith.constant 1.000000e+00 : f32
    %26 = vector.broadcast %cst_17 : f32 to vector<1x384xf32>
    %27 = arith.addf %26, %25 : vector<1x384xf32>
    %28 = arith.divf %26, %27 : vector<1x384xf32>
    %c0_18 = arith.constant 0 : index
    %c0_19 = arith.constant 0 : index
    %29 = vector.load %arg8[%c0_18, %c0_19] : memref<1x384xf32, #tpu.memory_space<vmem>>, vector<1x384xf32>
    tpu.vector_store %arg8[%c0_18, %c0_19], %28 {strides = array<i32>} : memref<1x384xf32, #tpu.memory_space<vmem>>, vector<1x384xf32>,
    return
  }
  func.func @transform_0(%arg0: i32) -> (i32, i32) {
    %c0_i32 = arith.constant 0 : i32
    %c0_i32_0 = arith.constant 0 : i32
    return %arg0, %c0_i32 : i32, i32
  }
  func.func @transform_1(%arg0: i32) -> (i32, i32) {
    %c0_i32 = arith.constant 0 : i32
    %c0_i32_0 = arith.constant 0 : i32
    %c0_i32_1 = arith.constant 0 : i32
    return %c0_i32, %c0_i32_0 : i32, i32
  }
  func.func @transform_2(%arg0: i32) -> (i32, i32) {
    %c0_i32 = arith.constant 0 : i32
    %c0_i32_0 = arith.constant 0 : i32
    %c0_i32_1 = arith.constant 0 : i32
    return %c0_i32, %c0_i32_0 : i32, i32
  }
  func.func @transform_3(%arg0: i32) -> (i32, i32) {
    %c0_i32 = arith.constant 0 : i32
    %c0_i32_0 = arith.constant 0 : i32
    %c0_i32_1 = arith.constant 0 : i32
    return %c0_i32, %c0_i32_0 : i32, i32
  }
  func.func @transform_4(%arg0: i32) -> (i32, i32) {
    %c0_i32 = arith.constant 0 : i32
    %c0_i32_0 = arith.constant 0 : i32
    %c0_i32_1 = arith.constant 0 : i32
    return %c0_i32, %c0_i32_0 : i32, i32
  }
  func.func @transform_5(%arg0: i32) -> (i32, i32) {
    %c0_i32 = arith.constant 0 : i32
    %c0_i32_0 = arith.constant 0 : i32
    %c0_i32_1 = arith.constant 0 : i32
    return %c0_i32, %c0_i32_0 : i32, i32
  }
  func.func @transform_6(%arg0: i32) -> (i32, i32) {
    %c0_i32 = arith.constant 0 : i32
    %c0_i32_0 = arith.constant 0 : i32
    %c0_i32_1 = arith.constant 0 : i32
    return %c0_i32, %c0_i32_0 : i32, i32
  }
  func.func @transform_7(%arg0: i32) -> (i32, i32) {
    %c0_i32 = arith.constant 0 : i32
    %c0_i32_0 = arith.constant 0 : i32
    return %c0_i32, %arg0 : i32, i32
  }
}

</mosaic_0001>

<bundles_post_ra>
// kernel: tpu_custom_call.1
= control target key start
LH: loop header
LB: loop body
LE: loop exit
PB: predicated region body
PF: predicated region fallthrough
CT: control target
= control target key end

     0   :  { %s1315_s0 = inlined_call_operand.vmem [shape: f32[384,32], index: 0, kind: input, shape index: {}]   ;;  %s1316_s1 = inlined_call_operand.vmem [shape: bf16[32,128], index: 1, kind: input, shape index: {}]   ;;  %s1317_s2 = inlined_call_operand.vmem [shape: f32[1,128], index: 2, kind: input, shape index: {}]   ;;  %s1318_s3 = inlined_call_operand.vmem [shape: bf16[128,128], index: 3, kind: input, shape index: {}]   ;;  %s1319_s4 = inlined_call_operand.vmem [shape: f32[1,128], index: 4, kind: input, shape index: {}]   ;;  %s1320_s5 = inlined_call_operand.vmem [shape: bf16[8,128], index: 5, kind: input, shape index: {}]   ;;  %s1321_s6 = inlined_call_operand.<no memory space> [shape: f32[1,1], index: 6, kind: input, shape index: {}]   ;;  %s1322_s7 = inlined_call_operand.hbm [shape: f32[1,384], index: 7, kind: output, shape index: {}]  }
   0x1   :  { %v12_v0 = vstv %s1321_s6 }
   0x2   :  { %13 = vst [vmem:[#allocation2] sm:$0x1] %v12_v0 }
   0x3   :  { %v871_v1 = vld [vmem:[%s1316_s1 + $0x8] sm:$0xff]  ;;  %v870_v2 = vld [vmem:[%s1316_s1] sm:$0xff] }
   0x4   :  { %201 = vmatpush.bf16.msra.mxu0 %v871_v1  ;;  %v30_v3 = vld [vmem:[%s1315_s0] sm:$0xff]  ;;  %v31_v4 = vld [vmem:[%s1315_s0 + $0x8] sm:$0xff]  ;;  %880 = vmatpush.bf16.msra.mxu2 %v871_v1 }
   0x5   :  { %14 = vsyncpa [#allocation4], 0  ;;  %v83_v5 = vpack.c.bf16 %v31_v4, %v30_v3  ;;  %vm122_vm0 = vcmask 261120   ;;  %v32_v6 = vld [vmem:[%s1315_s0 + $0x10] sm:$0xff]  ;;  %v33_v7 = vld [vmem:[%s1315_s0 + $0x18] sm:$0xff]  ;;  %vm777_vm9 = vcmask 1040384  }
   0x6   :  { %v84_v8 = vpack.c.bf16 %v33_v7, %v32_v6  ;;  %v34_v9 = vld [vmem:[%s1315_s0 + $0x20] sm:$0xff]  ;;  %v35_v10 = vld [vmem:[%s1315_s0 + $0x28] sm:$0xff]  ;;  %v36_v12 = vld [vmem:[%s1315_s0 + $0x30] sm:$0xff]  ;;  %s794_s18 = sshll.u32 %s1322_s7, 4  ;;  %vm779_vm14 = vcmask 1041408   ;;  %s795_s18 = int_to_ptr.hbm [resolvable:$true] %s794_s18 }
   0x7   :  { %v85_v11 = vpack.c.bf16 %v35_v10, %v34_v9  ;;  %v37_v13 = vld [vmem:[%s1315_s0 + $0x38] sm:$0xff]  ;;  %v38_v15 = vld [vmem:[%s1315_s0 + $0x40] sm:$0xff]  ;;  %v39_v16 = vld [vmem:[%s1315_s0 + $0x48] sm:$0xff] }
   0x8   :  { %202 = vmatpush.bf16.msra.mxu0 %v870_v2  ;;  %881 = vmatpush.bf16.msra.mxu2 %v870_v2  ;;  %v86_v14 = vpack.c.bf16 %v37_v13, %v36_v12  ;;  %v87_v17 = vpack.c.bf16 %v39_v16, %v38_v15  ;;  %v879_v18 = vld [vmem:[%s1318_s3 + $0x38] sm:$0xff]  ;;  %v40_v19 = vld [vmem:[%s1315_s0 + $0x50] sm:$0xff]  ;;  %v877_v23 = vld [vmem:[%s1318_s3 + $0x28] sm:$0xff] }
   0x9   :  { %464 = vmatpush.bf16.msra.mxu1 %v879_v18  ;;  %882 = vmatpush.bf16.msra.mxu3 %v879_v18  ;;  %v41_v20 = vld [vmem:[%s1315_s0 + $0x58] sm:$0xff]  ;;  %v878_v22 = vld [vmem:[%s1318_s3 + $0x30] sm:$0xff]  ;;  %v876_v24 = vld [vmem:[%s1318_s3 + $0x20] sm:$0xff] }
   0xa   :  { %v88_v21 = vpack.c.bf16 %v41_v20, %v40_v19  ;;  %v42_v25 = vld [vmem:[%s1315_s0 + $0x60] sm:$0xff]  ;;  %v43_v26 = vld [vmem:[%s1315_s0 + $0x68] sm:$0xff]  ;;  %v875_v27 = vld [vmem:[%s1318_s3 + $0x18] sm:$0xff] }
   0xb   :  { %811 = vmatmul.msk.bf16.vlgmr.msra.gmra.mxu0 %vm122_vm0, %v83_v5  ;;  %v89_v28 = vpack.c.bf16 %v43_v26, %v42_v25  ;;  %v874_v29 = vld [vmem:[%s1318_s3 + $0x10] sm:$0xff]  ;;  %v873_v30 = vld [vmem:[%s1318_s3 + $0x8] sm:$0xff]  ;;  %v872_v31 = vld [vmem:[%s1318_s3] sm:$0xff] }
   0xc   :  { %v44_v32 = vld [vmem:[%s1315_s0 + $0x70] sm:$0xff]  ;;  %v45_v33 = vld [vmem:[%s1315_s0 + $0x78] sm:$0xff]  ;;  %v46_v35 = vld [vmem:[%s1315_s0 + $0x80] sm:$0xff] }
   0xd   :  { %465 = vmatpush.bf16.msra.mxu1 %v878_v22  ;;  %883 = vmatpush.bf16.msra.mxu3 %v878_v22  ;;  %v90_v34 = vpack.c.bf16 %v45_v33, %v44_v32  ;;  %v47_v36 = vld [vmem:[%s1315_s0 + $0x88] sm:$0xff]  ;;  %v1073_v39 = vld [vmem:[%s1317_s2] ss:$0 sm:$0xff]  ;;  %v48_v45 = vld [vmem:[%s1315_s0 + $0x90] sm:$0xff] }
   0xe   :  { %v91_v37 = vpack.c.bf16 %v47_v36, %v46_v35  ;;  %v49_v46 = vld [vmem:[%s1315_s0 + $0x98] sm:$0xff]  ;;  %v50_v55 = vld [vmem:[%s1315_s0 + $0xa0] sm:$0xff]  ;;  %v51_v56 = vld [vmem:[%s1315_s0 + $0xa8] sm:$0xff] }
   0xf   :  { %v92_v48 = vpack.c.bf16 %v49_v46, %v48_v45  ;;  %v93_v58 = vpack.c.bf16 %v51_v56, %v50_v55  ;;  %v52_v1 = vld [vmem:[%s1315_s0 + $0xb0] sm:$0xff]  ;;  %v53_v2 = vld [vmem:[%s1315_s0 + $0xb8] sm:$0xff]  ;;  %v55_v12 = vld [vmem:[%s1315_s0 + $0xc8] sm:$0xff] }
  0x10   :  { %v94_v4 = vpack.c.bf16 %v53_v2, %v52_v1  ;;  %v60_v16 = vld [vmem:[%s1315_s0 + $0xf0] sm:$0xff]  ;;  %v57_v25 = vld [vmem:[%s1315_s0 + $0xd8] sm:$0xff] }
  0x11   :  { %466 = vmatpush.bf16.msra.mxu1 %v877_v23  ;;  %884 = vmatpush.bf16.msra.mxu3 %v877_v23 }
  0x15   :  { %467 = vmatpush.bf16.msra.mxu1 %v876_v24  ;;  %885 = vmatpush.bf16.msra.mxu3 %v876_v24  ;;  %v56_v24 = vld [vmem:[%s1315_s0 + $0xd0] sm:$0xff] }
  0x19   :  { %468 = vmatpush.bf16.msra.mxu1 %v875_v27  ;;  %886 = vmatpush.bf16.msra.mxu3 %v875_v27  ;;  %v96_v27 = vpack.c.bf16 %v57_v25, %v56_v24 }
  0x1b   :  { %812 = vmatmul.msk.bf16.gmra.mxu0 %vm122_vm0, %v84_v8 }
  0x1d   :  { %469 = vmatpush.bf16.msra.mxu1 %v874_v29  ;;  %887 = vmatpush.bf16.msra.mxu3 %v874_v29  ;;  %v62_v29 = vld [vmem:[%s1315_s0 + $0x100] sm:$0xff] }
  0x21   :  { %470 = vmatpush.bf16.msra.mxu1 %v873_v30  ;;  %888 = vmatpush.bf16.msra.mxu3 %v873_v30  ;;  %v63_v30 = vld [vmem:[%s1315_s0 + $0x108] sm:$0xff] }
  0x25   :  { %471 = vmatpush.bf16.msra.mxu1 %v872_v31  ;;  %889 = vmatpush.bf16.msra.mxu3 %v872_v31  ;;  %v99_v31 = vpack.c.bf16 %v63_v30, %v62_v29  ;;  %v73_v29 = vld [vmem:[%s1315_s0 + $0x158] sm:$0xff] }
  0x2b   :  { %813 = vmatmul.msk.bf16.gmra.mxu0 %vm122_vm0, %v85_v11  ;;  %v54_v11 = vld [vmem:[%s1315_s0 + $0xc0] sm:$0xff] }
  0x3b   :  { %814 = vmatmul.msk.bf16.gmra.mxu0 %vm122_vm0, %v86_v14  ;;  %v95_v14 = vpack.c.bf16 %v55_v12, %v54_v11  ;;  %v70_v11 = vld [vmem:[%s1315_s0 + $0x140] sm:$0xff]  ;;  %v71_v12 = vld [vmem:[%s1315_s0 + $0x148] sm:$0xff] }
  0x4b   :  { %815 = vmatmul.msk.bf16.gmra.mxu0 %vm122_vm0, %v87_v17  ;;  %v61_v17 = vld [vmem:[%s1315_s0 + $0xf8] sm:$0xff] }
  0x4c   :  { %v98_v18 = vpack.c.bf16 %v61_v17, %v60_v16 }
  0x4e   :  { %826 = vmatmul.msk.bf16.vlgmr.msra.gmra.mxu2 %vm122_vm0, %v98_v18 }
  0x5b   :  { %816 = vmatmul.msk.bf16.gmra.mxu0 %vm122_vm0, %v88_v21 }
  0x5e   :  { %827 = vmatmul.msk.bf16.gmra.mxu2 %vm122_vm0, %v99_v31 }
  0x6b   :  { %817 = vmatmul.msk.bf16.gmra.mxu0 %vm122_vm0, %v89_v28 }
  0x7b   :  { %818 = vmatmul.msk.bf16.gmra.mxu0 %vm122_vm0, %v90_v34 }
  0x88   :  { %v204_v38 = vpop.f32.mrf.mxu0 }
  0x89   :  { %v205_v40 = vadd.f32 %v1073_v39, %v204_v38  ;;  %v59_v38 = vld [vmem:[%s1315_s0 + $0xe8] sm:$0xff] }
  0x8b   :  { %819 = vmatmul.msk.bf16.gmra.mxu0 %vm122_vm0, %v91_v37  ;;  %v324_v43 = vmax.f32 %v205_v40, 0.0  ;;  %v58_v37 = vld [vmem:[%s1315_s0 + $0xe0] sm:$0xff] }
  0x90   :  { %v206_v41 = vpop.f32.mrf.mxu0 }
  0x91   :  { %v207_v42 = vadd.f32 %v1073_v39, %v206_v41  ;;  %v97_v41 = vpack.c.bf16 %v59_v38, %v58_v37 }
  0x93   :  { %v325_v44 = vmax.f32 %v207_v42, 0.0 }
  0x95   :  { %v389_v47 = vpack.c.bf16 %v325_v44, %v324_v43  ;;  %v64_v43 = vld [vmem:[%s1315_s0 + $0x110] sm:$0xff]  ;;  %v65_v44 = vld [vmem:[%s1315_s0 + $0x118] sm:$0xff] }
  0x96   :  { %v100_v45 = vpack.c.bf16 %v65_v44, %v64_v43 }
  0x97   :  { %472 = vmatmul.bf16.vlgmr.msra.gmra.mxu1 %v389_v47 }
  0x98   :  { %v209_v49 = vpop.f32.mrf.mxu0  ;;  %828 = vmatmul.msk.bf16.gmra.mxu2 %vm122_vm0, %v100_v45 }
  0x99   :  { %v210_v50 = vadd.f32 %v1073_v39, %v209_v49 }
  0x9b   :  { %820 = vmatmul.msk.bf16.gmra.mxu0 %vm122_vm0, %v92_v48  ;;  %v326_v53 = vmax.f32 %v210_v50, 0.0 }
  0xa0   :  { %v211_v51 = vpop.f32.mrf.mxu0 }
  0xa1   :  { %v212_v52 = vadd.f32 %v1073_v39, %v211_v51 }
  0xa3   :  { %v327_v54 = vmax.f32 %v212_v52, 0.0 }
  0xa5   :  { %v390_v57 = vpack.c.bf16 %v327_v54, %v326_v53  ;;  %v66_v53 = vld [vmem:[%s1315_s0 + $0x120] sm:$0xff]  ;;  %v67_v54 = vld [vmem:[%s1315_s0 + $0x128] sm:$0xff] }
  0xa6   :  { %v101_v55 = vpack.c.bf16 %v67_v54, %v66_v53 }
  0xa7   :  { %477 = vmatmul.bf16.gmra.mxu1 %v390_v57 }
  0xa8   :  { %v214_v59 = vpop.f32.mrf.mxu0  ;;  %829 = vmatmul.msk.bf16.gmra.mxu2 %vm122_vm0, %v101_v55 }
  0xa9   :  { %v215_v60 = vadd.f32 %v1073_v39, %v214_v59 }
  0xab   :  { %821 = vmatmul.msk.bf16.gmra.mxu0 %vm122_vm0, %v93_v58  ;;  %v328_v63 = vmax.f32 %v215_v60, 0.0 }
  0xb0   :  { %v216_v61 = vpop.f32.mrf.mxu0 }
  0xb1   :  { %v217_v62 = vadd.f32 %v1073_v39, %v216_v61 }
  0xb3   :  { %v329_v0 = vmax.f32 %v217_v62, 0.0 }
  0xb5   :  { %v391_v3 = vpack.c.bf16 %v329_v0, %v328_v63  ;;  %v68_v63 = vld [vmem:[%s1315_s0 + $0x130] sm:$0xff]  ;;  %v69_v0 = vld [vmem:[%s1315_s0 + $0x138] sm:$0xff] }
  0xb6   :  { %v102_v1 = vpack.c.bf16 %v69_v0, %v68_v63  ;;  %v76_v63 = vld [vmem:[%s1315_s0 + $0x170] sm:$0xff]  ;;  %v77_v0 = vld [vmem:[%s1315_s0 + $0x178] sm:$0xff] }
  0xb7   :  { %482 = vmatmul.bf16.gmra.mxu1 %v391_v3 }
  0xb8   :  { %v219_v5 = vpop.f32.mrf.mxu0  ;;  %830 = vmatmul.msk.bf16.gmra.mxu2 %vm122_vm0, %v102_v1 }
  0xb9   :  { %v220_v6 = vadd.f32 %v1073_v39, %v219_v5 }
  0xbb   :  { %822 = vmatmul.msk.bf16.gmra.mxu0 %vm122_vm0, %v94_v4  ;;  %v330_v9 = vmax.f32 %v220_v6, 0.0 }
  0xc0   :  { %v221_v7 = vpop.f32.mrf.mxu0 }
  0xc1   :  { %v222_v8 = vadd.f32 %v1073_v39, %v221_v7 }
  0xc3   :  { %v331_v10 = vmax.f32 %v222_v8, 0.0 }
  0xc5   :  { %v392_v13 = vpack.c.bf16 %v331_v10, %v330_v9  ;;  %v1174_v9 = vld [vmem:[%s1319_s4] ss:$0 sm:$0xff] }
  0xc7   :  { %487 = vmatmul.bf16.gmra.mxu1 %v392_v13 }
  0xc8   :  { %v224_v15 = vpop.f32.mrf.mxu0 }
  0xc9   :  { %v225_v19 = vadd.f32 %v1073_v39, %v224_v15 }
  0xcb   :  { %823 = vmatmul.msk.bf16.gmra.mxu0 %vm122_vm0, %v95_v14  ;;  %v332_v22 = vmax.f32 %v225_v19, 0.0  ;;  %v103_v14 = vpack.c.bf16 %v71_v12, %v70_v11 }
  0xcd   :  { %831 = vmatmul.msk.bf16.gmra.mxu2 %vm122_vm0, %v103_v14 }
  0xd0   :  { %v226_v20 = vpop.f32.mrf.mxu0 }
  0xd1   :  { %v227_v21 = vadd.f32 %v1073_v39, %v226_v20 }
  0xd3   :  { %v333_v23 = vmax.f32 %v227_v21, 0.0 }
  0xd5   :  { %v393_v26 = vpack.c.bf16 %v333_v23, %v332_v22 }
  0xd7   :  { %492 = vmatmul.bf16.gmra.mxu1 %v393_v26 }
  0xd8   :  { %v229_v28 = vpop.f32.mrf.mxu0 }
  0xd9   :  { %v230_v32 = vadd.f32 %v1073_v39, %v229_v28  ;;  %v72_v28 = vld [vmem:[%s1315_s0 + $0x150] sm:$0xff] }
  0xda   :  { %v104_v31 = vpack.c.bf16 %v73_v29, %v72_v28 }
  0xdb   :  { %824 = vmatmul.msk.bf16.gmra.mxu0 %vm122_vm0, %v96_v27  ;;  %v334_v35 = vmax.f32 %v230_v32, 0.0 }
  0xdd   :  { %832 = vmatmul.msk.bf16.gmra.mxu2 %vm122_vm0, %v104_v31 }
  0xe0   :  { %v231_v33 = vpop.f32.mrf.mxu0 }
  0xe1   :  { %v232_v34 = vadd.f32 %v1073_v39, %v231_v33 }
  0xe3   :  { %v335_v36 = vmax.f32 %v232_v34, 0.0 }
  0xe5   :  { %v394_v40 = vpack.c.bf16 %v335_v36, %v334_v35 }
  0xe7   :  { %497 = vmatmul.bf16.gmra.mxu1 %v394_v40 }
  0xe8   :  { %v234_v42 = vpop.f32.mrf.mxu0 }
  0xe9   :  { %v235_v46 = vadd.f32 %v1073_v39, %v234_v42 }
  0xeb   :  { %825 = vmatmul.msk.bf16.gmra.mxu0 %vm122_vm0, %v97_v41  ;;  %v336_v49 = vmax.f32 %v235_v46, 0.0  ;;  %v74_v46 = vld [vmem:[%s1315_s0 + $0x160] sm:$0xff] }
  0xf0   :  { %v236_v47 = vpop.f32.mrf.mxu0 }
  0xf1   :  { %v237_v48 = vadd.f32 %v1073_v39, %v236_v47  ;;  %v75_v47 = vld [vmem:[%s1315_s0 + $0x168] sm:$0xff] }
  0xf3   :  { %v337_v50 = vmax.f32 %v237_v48, 0.0 }
  0xf5   :  { %v395_v51 = vpack.c.bf16 %v337_v50, %v336_v49  ;;  %v105_v49 = vpack.c.bf16 %v75_v47, %v74_v46 }
  0xf7   :  { %502 = vmatmul.bf16.gmra.mxu1 %v395_v51  ;;  %833 = vmatmul.msk.bf16.gmra.mxu2 %vm122_vm0, %v105_v49 }
  0xf8   :  { %v239_v52 = vpop.f32.mrf.mxu0 }
  0xf9   :  { %v240_v56 = vadd.f32 %v1073_v39, %v239_v52 }
  0xfb   :  { %v338_v59 = vmax.f32 %v240_v56, 0.0 }
 0x100   :  { %v241_v57 = vpop.f32.mrf.mxu0 }
 0x101   :  { %v242_v58 = vadd.f32 %v1073_v39, %v241_v57 }
 0x103   :  { %v339_v60 = vmax.f32 %v242_v58, 0.0 }
 0x105   :  { %v396_v61 = vpack.c.bf16 %v339_v60, %v338_v59 }
 0x107   :  { %507 = vmatmul.bf16.gmra.mxu1 %v396_v61 }
 0x108   :  { %v244_v62 = vpop.f32.mrf.mxu0 }
 0x109   :  { %v245_v2 = vadd.f32 %v1073_v39, %v244_v62 }
 0x10b   :  { %v340_v5 = vmax.f32 %v245_v2, 0.0  ;;  %v106_v2 = vpack.c.bf16 %v77_v0, %v76_v63 }
 0x10d   :  { %834 = vmatmul.msk.bf16.gmra.mxu2 %vm122_vm0, %v106_v2 }
 0x110   :  { %v246_v3 = vpop.f32.mrf.mxu0 }
 0x111   :  { %v247_v4 = vadd.f32 %v1073_v39, %v246_v3 }
 0x113   :  { %v341_v6 = vmax.f32 %v247_v4, 0.0 }
 0x114   :  { %v473_v7 = vpop.f32.mrf.mxu1 }
 0x115   :  { %v397_v8 = vpack.c.bf16 %v341_v6, %v340_v5  ;;  %v474_v13 = vadd.f32 %v1174_v9, %v473_v7 }
 0x117   :  { %512 = vmatmul.bf16.gmra.mxu1 %v397_v8  ;;  %v593_v17 = vmax.f32 %v474_v13, 0.0 }
 0x118   :  { %v249_v10 = vpop.f32.mrf.mxu0 }
 0x119   :  { %v250_v18 = vadd.f32 %v1073_v39, %v249_v10  ;;  %v279_v10 = vpop.f32.mrf.mxu2 }
 0x11b   :  { %v342_v23 = vmax.f32 %v250_v18, 0.0 }
 0x11c   :  { %v475_v15 = vpop.f32.mrf.mxu1 }
 0x11d   :  { %v476_v16 = vadd.f32 %v1174_v9, %v475_v15 }
 0x11f   :  { %v594_v19 = vmax.f32 %v476_v16, 0.0 }
 0x120   :  { %v251_v20 = vpop.f32.mrf.mxu0 }
 0x121   :  { %v252_v21 = vadd.f32 %v1073_v39, %v251_v20  ;;  %v1187_v22 = vpack.c.bf16 %v594_v19, %v593_v17  ;;  %v281_v18 = vpop.f32.mrf.mxu2 }
 0x122   :  { %v282_v49 = vadd.f32 %v1073_v39, %v281_v18 }
 0x123   :  { %v343_v24 = vmax.f32 %v252_v21, 0.0 }
 0x124   :  { %v478_v25 = vpop.f32.mrf.mxu1 }
 0x125   :  { %v398_v26 = vpack.c.bf16 %v343_v24, %v342_v23  ;;  %v479_v30 = vadd.f32 %v1174_v9, %v478_v25 }
 0x127   :  { %517 = vmatmul.bf16.gmra.mxu1 %v398_v26  ;;  %v595_v34 = vmax.f32 %v479_v30, 0.0 }
 0x128   :  { %v254_v27 = vpop.f32.mrf.mxu0 }
 0x129   :  { %v255_v35 = vadd.f32 %v1073_v39, %v254_v27 }
 0x12b   :  { %v344_v41 = vmax.f32 %v255_v35, 0.0 }
 0x12c   :  { %v480_v32 = vpop.f32.mrf.mxu1 }
 0x12d   :  { %v481_v33 = vadd.f32 %v1174_v9, %v480_v32  ;;  %v284_v32 = vpop.f32.mrf.mxu2 }
 0x12f   :  { %v596_v36 = vmax.f32 %v481_v33, 0.0 }
 0x130   :  { %v256_v37 = vpop.f32.mrf.mxu0 }
 0x131   :  { %v257_v38 = vadd.f32 %v1073_v39, %v256_v37  ;;  %v1200_v40 = vpack.c.bf16 %v596_v36, %v595_v34 }
 0x133   :  { %v345_v42 = vmax.f32 %v257_v38, 0.0 }
 0x134   :  { %v483_v43 = vpop.f32.mrf.mxu1 }
 0x135   :  { %v399_v44 = vpack.c.bf16 %v345_v42, %v344_v41  ;;  %v484_v48 = vadd.f32 %v1174_v9, %v483_v43  ;;  %v286_v36 = vpop.f32.mrf.mxu2 }
 0x137   :  { %522 = vmatmul.bf16.gmra.mxu1 %v399_v44  ;;  %v597_v52 = vmax.f32 %v484_v48, 0.0  ;;  %v280_v48 = vadd.f32 %v1073_v39, %v279_v10 }
 0x138   :  { %v259_v45 = vpop.f32.mrf.mxu0 }
 0x139   :  { %v260_v53 = vadd.f32 %v1073_v39, %v259_v45 }
 0x13b   :  { %v346_v58 = vmax.f32 %v260_v53, 0.0 }
 0x13c   :  { %v485_v50 = vpop.f32.mrf.mxu1 }
 0x13d   :  { %v486_v51 = vadd.f32 %v1174_v9, %v485_v50  ;;  %v289_v46 = vpop.f32.mrf.mxu2  ;;  %v354_v50 = vmax.f32 %v280_v48, 0.0 }
 0x13e   :  { %v290_v18 = vadd.f32 %v1073_v39, %v289_v46 }
 0x13f   :  { %v598_v54 = vmax.f32 %v486_v51, 0.0  ;;  %v355_v51 = vmax.f32 %v282_v49, 0.0 }
 0x140   :  { %v261_v55 = vpop.f32.mrf.mxu0 }
 0x141   :  { %v262_v56 = vadd.f32 %v1073_v39, %v261_v55  ;;  %v1213_v57 = vpack.c.bf16 %v598_v54, %v597_v52  ;;  %v404_v54 = vpack.c.bf16 %v355_v51, %v354_v50 }
 0x143   :  { %v347_v59 = vmax.f32 %v262_v56, 0.0 }
 0x144   :  { %v488_v60 = vpop.f32.mrf.mxu1 }
 0x145   :  { %v400_v61 = vpack.c.bf16 %v347_v59, %v346_v58  ;;  %v489_v1 = vadd.f32 %v1174_v9, %v488_v60  ;;  %v291_v52 = vpop.f32.mrf.mxu2  ;;  %v285_v59 = vadd.f32 %v1073_v39, %v284_v32  ;;  %v287_v60 = vadd.f32 %v1073_v39, %v286_v36 }
 0x147   :  { %527 = vmatmul.bf16.gmra.mxu1 %v400_v61  ;;  %v599_v5 = vmax.f32 %v489_v1, 0.0  ;;  %v356_v1 = vmax.f32 %v285_v59, 0.0  ;;  %v357_v2 = vmax.f32 %v287_v60, 0.0 }
 0x148   :  { %v264_v62 = vpop.f32.mrf.mxu0 }
 0x149   :  { %v265_v6 = vadd.f32 %v1073_v39, %v264_v62 }
 0x14b   :  { %v348_v13 = vmax.f32 %v265_v6, 0.0 }
 0x14c   :  { %v490_v3 = vpop.f32.mrf.mxu1 }
 0x14d   :  { %v491_v4 = vadd.f32 %v1174_v9, %v490_v3  ;;  %v294_v58 = vpop.f32.mrf.mxu2 }
 0x14e   :  { %v295_v36 = vadd.f32 %v1073_v39, %v294_v58 }
 0x14f   :  { %v600_v7 = vmax.f32 %v491_v4, 0.0 }
 0x150   :  { %v266_v8 = vpop.f32.mrf.mxu0 }
 0x151   :  { %v267_v11 = vadd.f32 %v1073_v39, %v266_v8  ;;  %v1226_v12 = vpack.c.bf16 %v600_v7, %v599_v5  ;;  %v405_v7 = vpack.c.bf16 %v357_v2, %v356_v1 }
 0x153   :  { %v349_v14 = vmax.f32 %v267_v11, 0.0 }
 0x154   :  { %v493_v15 = vpop.f32.mrf.mxu1 }
 0x155   :  { %v401_v16 = vpack.c.bf16 %v349_v14, %v348_v13  ;;  %v494_v19 = vadd.f32 %v1174_v9, %v493_v15  ;;  %v296_v8 = vpop.f32.mrf.mxu2 }
 0x157   :  { %532 = vmatmul.bf16.gmra.mxu1 %v401_v16  ;;  %v601_v23 = vmax.f32 %v494_v19, 0.0  ;;  %v292_v19 = vadd.f32 %v1073_v39, %v291_v52 }
 0x158   :  { %v269_v17 = vpop.f32.mrf.mxu0 }
 0x159   :  { %v270_v24 = vadd.f32 %v1073_v39, %v269_v17 }
 0x15b   :  { %v350_v29 = vmax.f32 %v270_v24, 0.0 }
 0x15c   :  { %v495_v20 = vpop.f32.mrf.mxu1 }
 0x15d   :  { %v496_v21 = vadd.f32 %v1174_v9, %v495_v20 }
 0x15f   :  { %v602_v25 = vmax.f32 %v496_v21, 0.0 }
 0x160   :  { %v271_v26 = vpop.f32.mrf.mxu0 }
 0x161   :  { %v272_v27 = vadd.f32 %v1073_v39, %v271_v26  ;;  %v1232_v28 = vpack.c.bf16 %v602_v25, %v601_v23  ;;  %v299_v25 = vpop.f32.mrf.mxu2  ;;  %v358_v26 = vmax.f32 %v290_v18, 0.0 }
 0x162   :  { %v300_v50 = vadd.f32 %v1073_v39, %v299_v25 }
 0x163   :  { %v351_v30 = vmax.f32 %v272_v27, 0.0  ;;  %v359_v27 = vmax.f32 %v292_v19, 0.0 }
 0x164   :  { %v498_v31 = vpop.f32.mrf.mxu1 }
 0x165   :  { %v402_v33 = vpack.c.bf16 %v351_v30, %v350_v29  ;;  %v499_v14 = vadd.f32 %v1174_v9, %v498_v31  ;;  %v406_v32 = vpack.c.bf16 %v359_v27, %v358_v26 }
 0x167   :  { %537 = vmatmul.bf16.gmra.mxu1 %v402_v33  ;;  %v603_v21 = vmax.f32 %v499_v14, 0.0 }
 0x168   :  { %v274_v34 = vpop.f32.mrf.mxu0 }
 0x169   :  { %v275_v37 = vadd.f32 %v1073_v39, %v274_v34  ;;  %v301_v33 = vpop.f32.mrf.mxu2 }
 0x16a   :  { %v302_v51 = vadd.f32 %v1073_v39, %v301_v33 }
 0x16b   :  { %v352_v42 = vmax.f32 %v275_v37, 0.0  ;;  %v297_v37 = vadd.f32 %v1073_v39, %v296_v8 }
 0x16c   :  { %v500_v35 = vpop.f32.mrf.mxu1 }
 0x16d   :  { %v501_v11 = vadd.f32 %v1174_v9, %v500_v35 }
 0x16f   :  { %v604_v17 = vmax.f32 %v501_v11, 0.0 }
 0x170   :  { %v276_v38 = vpop.f32.mrf.mxu0 }
 0x171   :  { %v277_v41 = vadd.f32 %v1073_v39, %v276_v38  ;;  %v648_v29 = vpack.c.bf16 %v604_v17, %v603_v21 }
 0x173   :  { %v353_v43 = vmax.f32 %v277_v41, 0.0 }
 0x174   :  { %v503_v44 = vpop.f32.mrf.mxu1 }
 0x175   :  { %v403_v45 = vpack.c.bf16 %v353_v43, %v352_v42  ;;  %v504_v4 = vadd.f32 %v1174_v9, %v503_v44  ;;  %v360_v43 = vmax.f32 %v295_v36, 0.0  ;;  %v361_v44 = vmax.f32 %v297_v37, 0.0 }
 0x177   :  { %542 = vmatmul.bf16.vlgmr.msra.gmra.mxu3 %v403_v45  ;;  %v605_v10 = vmax.f32 %v504_v4, 0.0  ;;  %v407_v48 = vpack.c.bf16 %v361_v44, %v360_v43 }
 0x17c   :  { %v505_v47 = vpop.f32.mrf.mxu1 }
 0x17d   :  { %v506_v0 = vadd.f32 %v1174_v9, %v505_v47  ;;  %v304_v47 = vpop.f32.mrf.mxu2 }
 0x17f   :  { %v606_v6 = vmax.f32 %v506_v0, 0.0 }
 0x181   :  { %v649_v13 = vpack.c.bf16 %v606_v6, %v605_v10 }
 0x184   :  { %v508_v53 = vpop.f32.mrf.mxu1 }
 0x185   :  { %v509_v55 = vadd.f32 %v1174_v9, %v508_v53  ;;  %v306_v53 = vpop.f32.mrf.mxu2 }
 0x187   :  { %547 = vmatmul.bf16.gmra.mxu3 %v404_v54  ;;  %v607_v62 = vmax.f32 %v509_v55, 0.0 }
 0x18c   :  { %v510_v56 = vpop.f32.mrf.mxu1 }
 0x18d   :  { %v511_v61 = vadd.f32 %v1174_v9, %v510_v56  ;;  %v362_v56 = vmax.f32 %v300_v50, 0.0  ;;  %v309_v60 = vpop.f32.mrf.mxu2 }
 0x18f   :  { %v608_v63 = vmax.f32 %v511_v61, 0.0  ;;  %v307_v61 = vadd.f32 %v1073_v39, %v306_v53 }
 0x191   :  { %v650_v3 = vpack.c.bf16 %v608_v63, %v607_v62  ;;  %v365_v63 = vmax.f32 %v307_v61, 0.0 }
 0x193   :  { %667 = vmatpush.bf16.xpose.msrb.mxu2 %v650_v3  ;;  %v310_v3 = vadd.f32 %v1073_v39, %v309_v60 }
 0x194   :  { %v513_v5 = vpop.f32.mrf.mxu1 }
 0x195   :  { %v514_v15 = vadd.f32 %v1174_v9, %v513_v5  ;;  %v311_v0 = vpop.f32.mrf.mxu2 }
 0x196   :  { %v312_v4 = vadd.f32 %v1073_v39, %v311_v0 }
 0x197   :  { %552 = vmatmul.bf16.gmra.mxu3 %v405_v7  ;;  %v609_v23 = vmax.f32 %v514_v15, 0.0 }
 0x198   :  { %v367_v5 = vmax.f32 %v312_v4, 0.0 }
 0x19b   :  { %668 = vmatpush.bf16.xpose.msrb.mxu2 %v649_v13 }
 0x19c   :  { %v515_v16 = vpop.f32.mrf.mxu1 }
 0x19d   :  { %v516_v20 = vadd.f32 %v1174_v9, %v515_v16  ;;  %v314_v2 = vpop.f32.mrf.mxu2 }
 0x19e   :  { %v315_v8 = vadd.f32 %v1073_v39, %v314_v2 }
 0x19f   :  { %v610_v24 = vmax.f32 %v516_v20, 0.0 }
 0x1a0   :  { %v368_v13 = vmax.f32 %v315_v8, 0.0 }
 0x1a1   :  { %v1250_v30 = vpack.c.bf16 %v610_v24, %v609_v23 }
 0x1a3   :  { %669 = vmatpush.bf16.xpose.msrb.mxu2 %v648_v29 }
 0x1a4   :  { %v518_v31 = vpop.f32.mrf.mxu1 }
 0x1a5   :  { %v519_v34 = vadd.f32 %v1174_v9, %v518_v31  ;;  %v316_v7 = vpop.f32.mrf.mxu2 }
 0x1a6   :  { %v317_v10 = vadd.f32 %v1073_v39, %v316_v7 }
 0x1a7   :  { %557 = vmatmul.bf16.gmra.mxu3 %v406_v32  ;;  %v611_v41 = vmax.f32 %v519_v34, 0.0 }
 0x1a8   :  { %v369_v14 = vmax.f32 %v317_v10, 0.0 }
 0x1aa   :  { %v411_v16 = vpack.c.bf16 %v369_v14, %v368_v13 }
 0x1ab   :  { %670 = vmatpush.bf16.xpose.msrb.mxu2 %v1232_v28 }
 0x1ac   :  { %v520_v35 = vpop.f32.mrf.mxu1 }
 0x1ad   :  { %v521_v38 = vadd.f32 %v1174_v9, %v520_v35  ;;  %v319_v11 = vpop.f32.mrf.mxu2 }
 0x1ae   :  { %v320_v19 = vadd.f32 %v1073_v39, %v319_v11 }
 0x1af   :  { %v612_v42 = vmax.f32 %v521_v38, 0.0 }
 0x1b0   :  { %v370_v23 = vmax.f32 %v320_v19, 0.0 }
 0x1b1   :  { %v1257_v45 = vpack.c.bf16 %v612_v42, %v611_v41 }
 0x1b3   :  { %671 = vmatpush.bf16.xpose.msrb.mxu2 %v1226_v12  ;;  %v363_v12 = vmax.f32 %v302_v51, 0.0 }
 0x1b4   :  { %v523_v46 = vpop.f32.mrf.mxu1 }
 0x1b5   :  { %v524_v28 = vadd.f32 %v1174_v9, %v523_v46  ;;  %v408_v59 = vpack.c.bf16 %v363_v12, %v362_v56  ;;  %v321_v17 = vpop.f32.mrf.mxu2 }
 0x1b6   :  { %v322_v20 = vadd.f32 %v1073_v39, %v321_v17 }
 0x1b7   :  { %562 = vmatmul.bf16.gmra.mxu3 %v407_v48  ;;  %v613_v54 = vmax.f32 %v524_v28, 0.0 }
 0x1b8   :  { %v371_v24 = vmax.f32 %v322_v20, 0.0 }
 0x1ba   :  { %v412_v26 = vpack.c.bf16 %v371_v24, %v370_v23 }
 0x1bb   :  { %672 = vmatpush.bf16.xpose.msrb.mxu2 %v1213_v57  ;;  %v305_v57 = vadd.f32 %v1073_v39, %v304_v47 }
 0x1bc   :  { %v525_v49 = vpop.f32.mrf.mxu1 }
 0x1bd   :  { %v526_v52 = vadd.f32 %v1174_v9, %v525_v49  ;;  %v364_v62 = vmax.f32 %v305_v57, 0.0 }
 0x1bf   :  { %v614_v55 = vmax.f32 %v526_v52, 0.0  ;;  %v409_v1 = vpack.c.bf16 %v365_v63, %v364_v62 }
 0x1c1   :  { %v1265_v58 = vpack.c.bf16 %v614_v55, %v613_v54 }
 0x1c3   :  { %673 = vmatpush.bf16.xpose.msrb.mxu2 %v1200_v40  ;;  %v366_v40 = vmax.f32 %v310_v3, 0.0 }
 0x1c5   :  { %v410_v6 = vpack.c.bf16 %v367_v5, %v366_v40 }
 0x1c7   :  { %567 = vmatmul.bf16.gmra.mxu3 %v408_v59 }
 0x1cb   :  { %674 = vmatpush.bf16.xpose.msrb.mxu2 %v1187_v22  ;;  %v528_v22 = vpop.f32.mrf.mxu1 }
 0x1cc   :  { %v529_v0 = vadd.f32 %v1174_v9, %v528_v22 }
 0x1ce   :  { %v615_v40 = vmax.f32 %v529_v0, 0.0 }
 0x1d3   :  { %v530_v15 = vpop.f32.mrf.mxu1 }
 0x1d4   :  { %v531_v62 = vadd.f32 %v1174_v9, %v530_v15 }
 0x1d6   :  { %v616_v3 = vmax.f32 %v531_v62, 0.0 }
 0x1d7   :  { %572 = vmatmul.bf16.gmra.mxu3 %v409_v1 }
 0x1d8   :  { %v654_v8 = vpack.c.bf16 %v616_v3, %v615_v40 }
 0x1db   :  { %v533_v21 = vpop.f32.mrf.mxu1 }
 0x1dc   :  { %v534_v59 = vadd.f32 %v1174_v9, %v533_v21 }
 0x1de   :  { %v617_v61 = vmax.f32 %v534_v59, 0.0 }
 0x1e3   :  { %v535_v27 = vpop.f32.mrf.mxu1 }
 0x1e4   :  { %v536_v55 = vadd.f32 %v1174_v9, %v535_v27 }
 0x1e6   :  { %v618_v57 = vmax.f32 %v536_v55, 0.0 }
 0x1e7   :  { %577 = vmatmul.bf16.gmra.mxu3 %v410_v6 }
 0x1e8   :  { %v655_v63 = vpack.c.bf16 %v618_v57, %v617_v61 }
 0x1eb   :  { %v538_v32 = vpop.f32.mrf.mxu1 }
 0x1ec   :  { %v539_v48 = vadd.f32 %v1174_v9, %v538_v32 }
 0x1ee   :  { %v619_v52 = vmax.f32 %v539_v48, 0.0 }
 0x1f3   :  { %v540_v43 = vpop.f32.mrf.mxu1 }
 0x1f4   :  { %v541_v46 = vadd.f32 %v1174_v9, %v540_v43 }
 0x1f6   :  { %v620_v50 = vmax.f32 %v541_v46, 0.0 }
 0x1f7   :  { %582 = vmatmul.bf16.gmra.mxu3 %v411_v16 }
 0x1f8   :  { %v656_v12 = vpack.c.bf16 %v620_v50, %v619_v52  ;;  %v933_v52 = vmov 0  }
 0x1f9   :  { %892 = vset.pattern.permute.xlu0 %v933_v52 }
 0x1fa   :  { %v543_v18 = vpop.f32.mrf.mxu3 }
 0x1fb   :  { %v544_v39 = vadd.f32 %v1174_v9, %v543_v18 }
 0x1fd   :  { %v621_v44 = vmax.f32 %v544_v39, 0.0 }
 0x202   :  { %v545_v25 = vpop.f32.mrf.mxu3 }
 0x203   :  { %v546_v37 = vadd.f32 %v1174_v9, %v545_v25 }
 0x205   :  { %v622_v42 = vmax.f32 %v546_v37, 0.0  ;;  %v641_v37 = vld [vmem:[%s1320_s5] sm:$0xf]  ;;  %s934_s5 = smov [#allocation3]  }
 0x206   :  { %675 = vmatmul.bf16.vlgmr.msrb.gmra.mxu2 %v641_v37  ;;  %s792_s15 = sshll.u32 %s934_s5, 4  ;;  %s793_s15 = int_to_ptr.vmem [resolvable:$true] %s792_s15 }
 0x207   :  { %587 = vmatmul.bf16.gmra.mxu3 %v412_v26  ;;  %v657_v47 = vpack.c.bf16 %v622_v42, %v621_v44 }
 0x20a   :  { %v548_v29 = vpop.f32.mrf.mxu3 }
 0x20b   :  { %v549_v31 = vadd.f32 %v1174_v9, %v548_v29 }
 0x20d   :  { %v623_v35 = vmax.f32 %v549_v31, 0.0 }
 0x212   :  { %v550_v33 = vpop.f32.mrf.mxu3 }
 0x213   :  { %v551_v34 = vadd.f32 %v1174_v9, %v550_v33 }
 0x215   :  { %v624_v36 = vmax.f32 %v551_v34, 0.0 }
 0x217   :  { %v658_v38 = vpack.c.bf16 %v624_v36, %v623_v35 }
 0x219   :  { %680 = vmatpush.bf16.xpose.msrb.mxu3 %v658_v38 }
 0x21a   :  { %v553_v41 = vpop.f32.mrf.mxu3 }
 0x21b   :  { %v554_v28 = vadd.f32 %v1174_v9, %v553_v41 }
 0x21d   :  { %v625_v53 = vmax.f32 %v554_v28, 0.0 }
 0x221   :  { %681 = vmatpush.bf16.xpose.msrb.mxu3 %v657_v47 }
 0x222   :  { %v555_v49 = vpop.f32.mrf.mxu3 }
 0x223   :  { %v556_v51 = vadd.f32 %v1174_v9, %v555_v49 }
 0x225   :  { %v626_v54 = vmax.f32 %v556_v51, 0.0  ;;  %v642_v51 = vld [vmem:[#allocation2] sm:$0x1] }
 0x226   :  { %708 = vperm.xlu0 %892, %v642_v51  }
 0x227   :  { %v1286_v56 = vpack.c.bf16 %v626_v54, %v625_v53 }
 0x229   :  { %682 = vmatpush.bf16.xpose.msrb.mxu3 %v656_v12 }
 0x22a   :  { %v558_v60 = vpop.f32.mrf.mxu3 }
 0x22b   :  { %v559_v1 = vadd.f32 %v1174_v9, %v558_v60 }
 0x22d   :  { %v627_v5 = vmax.f32 %v559_v1, 0.0 }
 0x231   :  { %683 = vmatpush.bf16.xpose.msrb.mxu3 %v655_v63 }
 0x232   :  { %v560_v2 = vpop.f32.mrf.mxu3 }
 0x233   :  { %v561_v4 = vadd.f32 %v1174_v9, %v560_v2 }
 0x235   :  { %v628_v6 = vmax.f32 %v561_v4, 0.0 }
 0x237   :  { %v660_v7 = vpack.c.bf16 %v628_v6, %v627_v5 }
 0x239   :  { %684 = vmatpush.bf16.xpose.msrb.mxu3 %v654_v8 }
 0x23a   :  { %v563_v10 = vpop.f32.mrf.mxu3 }
 0x23b   :  { %v564_v11 = vadd.f32 %v1174_v9, %v563_v10 }
 0x23d   :  { %v629_v14 = vmax.f32 %v564_v11, 0.0 }
 0x241   :  { %685 = vmatpush.bf16.xpose.msrb.mxu3 %v1265_v58 }
 0x242   :  { %v565_v13 = vpop.f32.mrf.mxu3 }
 0x243   :  { %v566_v22 = vadd.f32 %v1174_v9, %v565_v13 }
 0x245   :  { %v630_v15 = vmax.f32 %v566_v22, 0.0 }
 0x247   :  { %v661_v16 = vpack.c.bf16 %v630_v15, %v629_v14 }
 0x249   :  { %686 = vmatpush.bf16.xpose.msrb.mxu3 %v1257_v45 }
 0x24a   :  { %v568_v17 = vpop.f32.mrf.mxu3 }
 0x24b   :  { %v569_v18 = vadd.f32 %v1174_v9, %v568_v17 }
 0x24d   :  { %v631_v21 = vmax.f32 %v569_v18, 0.0 }
 0x251   :  { %687 = vmatpush.bf16.xpose.msrb.mxu3 %v1250_v30 }
 0x252   :  { %v570_v19 = vpop.f32.mrf.mxu3 }
 0x253   :  { %v571_v20 = vadd.f32 %v1174_v9, %v570_v19 }
 0x255   :  { %v632_v23 = vmax.f32 %v571_v20, 0.0 }
 0x257   :  { %v662_v24 = vpack.c.bf16 %v632_v23, %v631_v21 }
 0x258   :  { %688 = vmatmul.bf16.vlgmr.msrb.gmra.mxu3 %v641_v37 }
 0x25a   :  { %v573_v58 = vpop.f32.mrf.mxu3 }
 0x25b   :  { %v574_v25 = vadd.f32 %v1174_v9, %v573_v58 }
 0x25d   :  { %v633_v29 = vmax.f32 %v574_v25, 0.0 }
 0x262   :  { %v575_v26 = vpop.f32.mrf.mxu3 }
 0x263   :  { %v576_v27 = vadd.f32 %v1174_v9, %v575_v26 }
 0x265   :  { %v634_v31 = vmax.f32 %v576_v27, 0.0 }
 0x267   :  { %v663_v45 = vpack.c.bf16 %v634_v31, %v633_v29 }
 0x26a   :  { %v578_v32 = vpop.f32.mrf.mxu3 }
 0x26b   :  { %v579_v50 = vadd.f32 %v1174_v9, %v578_v32 }
 0x26d   :  { %v635_v54 = vmax.f32 %v579_v50, 0.0 }
 0x272   :  { %v580_v33 = vpop.f32.mrf.mxu3 }
 0x273   :  { %v581_v28 = vadd.f32 %v1174_v9, %v580_v33 }
 0x275   :  { %v636_v53 = vmax.f32 %v581_v28, 0.0 }
 0x277   :  { %v664_v55 = vpack.c.bf16 %v636_v53, %v635_v54 }
 0x27a   :  { %v583_v34 = vpop.f32.mrf.mxu3 }
 0x27b   :  { %v584_v46 = vadd.f32 %v1174_v9, %v583_v34 }
 0x27d   :  { %v637_v48 = vmax.f32 %v584_v46, 0.0 }
 0x282   :  { %v585_v35 = vpop.f32.mrf.mxu3 }
 0x283   :  { %v586_v43 = vadd.f32 %v1174_v9, %v585_v35 }
 0x285   :  { %v638_v47 = vmax.f32 %v586_v43, 0.0 }
 0x287   :  { %v665_v49 = vpack.c.bf16 %v638_v47, %v637_v48 }
 0x28a   :  { %v588_v30 = vpop.f32.mrf.mxu3 }
 0x28b   :  { %v589_v36 = vadd.f32 %v1174_v9, %v588_v30 }
 0x28d   :  { %v639_v41 = vmax.f32 %v589_v36, 0.0 }
 0x292   :  { %v590_v38 = vpop.f32.mrf.mxu3 }
 0x293   :  { %v591_v39 = vadd.f32 %v1174_v9, %v590_v38  ;;  %v676_v9 = vpop.f32.mrf.mxu2 }
 0x295   :  { %v640_v42 = vmax.f32 %v591_v39, 0.0 }
 0x297   :  { %v666_v44 = vpack.c.bf16 %v640_v42, %v639_v41  ;;  %v782_v41 = vlaneseq }
 0x298   :  { %v709_v12 = vpop.permute.xlu0 %708 }
 0x299   :  { %693 = vmatpush.bf16.xpose.msra.mxu2 %v666_v44  ;;  %v711_v60 = vperm.slane %v709_v12, 0  ;;  %vm784_vm15 = vcmp.lt.s32.totalorder %v782_v41, 384 }
 0x29b   :  { %v712_v61 = vadd.f32 %v711_v60, %v676_v9  ;;  %v678_v1 = vpop.f32.mrf.mxu2 }
 0x29d   :  { %v867_v63 = vmul.f32 -1.442695, %v712_v61 }
 0x2a1   :  { %694 = vmatpush.bf16.xpose.msra.mxu2 %v665_v49 }
 0x2a9   :  { %695 = vmatpush.bf16.xpose.msra.mxu2 %v664_v55 }
 0x2b1   :  { %696 = vmatpush.bf16.xpose.msra.mxu2 %v663_v45 }
 0x2b9   :  { %697 = vmatpush.bf16.xpose.msra.mxu2 %v662_v24 }
 0x2c1   :  { %698 = vmatpush.bf16.xpose.msra.mxu2 %v661_v16 }
 0x2c9   :  { %699 = vmatpush.bf16.xpose.msra.mxu2 %v660_v7 }
 0x2d1   :  { %700 = vmatpush.bf16.xpose.msra.mxu2 %v1286_v56 }
 0x2d8   :  { %701 = vmatmul.bf16.vlgmr.msra.gmra.mxu2 %v641_v37 }
 0x2db   :  { %v689_v59 = vpop.f32.mrf.mxu3 }
 0x2dc   :  { %v713_v57 = vadd.f32 %v711_v60, %v689_v59 }
 0x2de   :  { %v868_v62 = vmul.f32 -1.442695, %v713_v57 }
 0x2e0   :  { %895 = vpow2.f32 %v868_v62 }
 0x2e1   :  { %897 = vpow2.f32 %v867_v63 }
 0x2e3   :  { %v691_v0 = vpop.f32.mrf.mxu3 }
 0x2e6   :  { %v896_v2 = vpop.eup %895 }
 0x2e7   :  { %v898_v3 = vpop.eup %897  ;;  %v725_v4 = vadd.f32 1.0, %v896_v2 }
 0x2e8   :  { %v724_v40 = vadd.f32 1.0, %v898_v3 }
 0x2e9   :  { %899 = vrcp.f32 %v725_v4  ;;  %v753_v13 = vand.u32 2147483648, %v725_v4  ;;  %vm747_vm1 = vweird.f32 %v725_v4  ;;  %v751_v15 = vand.u32 2147483647, %v725_v4 }
 0x2ea   :  { %901 = vrcp.f32 %v724_v40  ;;  %v738_v16 = vand.u32 2147483648, %v724_v40  ;;  %vm732_vm4 = vweird.f32 %v724_v40  ;;  %v736_v19 = vand.u32 2147483647, %v724_v40 }
 0x2eb   :  { %v754_v17 = vor.u32 1.1754944e-38, %v753_v13  ;;  %vm752_vm7 = vcmp.eq.f32.partialorder %v751_v15, 8.507059e+37 }
 0x2ec   :  { %v739_v20 = vor.u32 1.1754944e-38, %v738_v16  ;;  %vm737_vm8 = vcmp.eq.f32.partialorder %v736_v19, 8.507059e+37 }
 0x2ef   :  { %v900_v56 = vpop.eup %899 }
 0x2f0   :  { %v902_v5 = vpop.eup %901  ;;  %v743_v6 = vmul.f32 %v900_v56, %v725_v4  ;;  %vm748_vm2 = vweird.f32 %v900_v56 }
 0x2f1   :  { %v728_v8 = vmul.f32 %v902_v5, %v724_v40  ;;  %vm749_vm3 = vmor %vm747_vm1, %vm748_vm2  ;;  %vm733_vm5 = vweird.f32 %v902_v5 }
 0x2f2   :  { %v744_v7 = vsub.f32 1.0, %v743_v6  ;;  %vm734_vm6 = vmor %vm732_vm4, %vm733_vm5 }
 0x2f3   :  { %v729_v11 = vsub.f32 1.0, %v728_v8 }
 0x2f4   :  { %v745_v10 = vmul.f32 %v900_v56, %v744_v7 }
 0x2f5   :  { %v730_v22 = vmul.f32 %v902_v5, %v729_v11 }
 0x2f6   :  { %v746_v14 = vadd.f32 %v900_v56, %v745_v10 }
 0x2f7   :  { %v731_v18 = vadd.f32 %v902_v5, %v730_v22 }
 0x2f8   :  { %v750_v21 = vsel %vm749_vm3, %v900_v56, %v746_v14 }
 0x2f9   :  { %v735_v23 = vsel %vm734_vm6, %v902_v5, %v731_v18  ;;  %v755_v24 = vsel %vm752_vm7, %v754_v17, %v750_v21 }
 0x2fa   :  { %v740_v58 = vsel %vm737_vm8, %v739_v20, %v735_v23  ;;  %v775_v25 = vrot.slane %v755_v24, 7 }
 0x2fc   :  { %v778_v26 = vsel %vm777_vm9, %v740_v58, %v775_v25 }
 0x35b   :  { %v702_v27 = vpop.f32.mrf.mxu2 }
 0x35c   :  { %v714_v29 = vadd.f32 %v711_v60, %v702_v27 }
 0x35e   :  { %v869_v31 = vmul.f32 -1.442695, %v714_v29 }
 0x360   :  { %903 = vpow2.f32 %v869_v31 }
 0x363   :  { %v704_v45 = vpop.f32.mrf.mxu2 }
 0x366   :  { %v904_v32 = vpop.eup %903 }
 0x367   :  { %v726_v33 = vadd.f32 1.0, %v904_v32 }
 0x369   :  { %905 = vrcp.f32 %v726_v33  ;;  %v768_v36 = vand.u32 2147483648, %v726_v33  ;;  %v766_v38 = vand.u32 2147483647, %v726_v33  ;;  %vm762_vm11 = vweird.f32 %v726_v33 }
 0x36b   :  { %v769_v42 = vor.u32 1.1754944e-38, %v768_v36  ;;  %vm767_vm13 = vcmp.eq.f32.partialorder %v766_v38, 8.507059e+37 }
 0x36f   :  { %v906_v34 = vpop.eup %905 }
 0x370   :  { %v758_v35 = vmul.f32 %v906_v34, %v726_v33  ;;  %vm763_vm10 = vweird.f32 %v906_v34 }
 0x371   :  { %vm764_vm12 = vmor %vm762_vm11, %vm763_vm10 }
 0x372   :  { %v759_v30 = vsub.f32 1.0, %v758_v35 }
 0x374   :  { %v760_v37 = vmul.f32 %v906_v34, %v759_v30 }
 0x376   :  { %v761_v39 = vadd.f32 %v906_v34, %v760_v37 }
 0x378   :  { %v765_v43 = vsel %vm764_vm12, %v906_v34, %v761_v39 }
 0x379   :  { %v770_v44 = vsel %vm767_vm13, %v769_v42, %v765_v43 }
 0x37a   :  { %v776_v46 = vrot.slane %v770_v44, 6 }
 0x37c   :  { %v780_v47 = vsel %vm779_vm14, %v778_v26, %v776_v46 }
 0x37d   :  { %786 = vst.msk [vmem:[#allocation3] sm:$0x7] %vm784_vm15, %v780_v47 }
 0x37e   :  { %797 = dma.vmem_to_hbm [thread:$0]  %s793_s15, 48, %s795_s18, [#allocation4]  }
 0x37f   :  { %931 = dma.done.wait [#allocation4], 48  }
 0x380   :  { %932 = vsyncadd [#allocation4], 4294967248 }
 0x381   :  { %802 = vsyncpa [#allocation4], 1 }

</bundles_post_ra>
